<compile_context>
chip_gen: v7x
topology: tpu7x:2x2x1
jax: 0.10.0
libtpu: 0.0.40
codegen_flags: <defaults>
</compile_context>

<pallas_src>
import functools

import jax
import jax.numpy as jnp
from jax import lax
from jax.experimental import pallas as pl
from jax.experimental.pallas import tpu as pltpu


def _squash(s, eps=1e-8):
    # TODO(synk): `squash` is referenced but not defined in the provided PyTorch
    # source; this is the standard capsule-network squash along the last axis.
    sq_norm = jnp.sum(s * s, axis=-1, keepdims=True)
    return (sq_norm / (1.0 + sq_norm)) * s * lax.rsqrt(sq_norm + eps)


def _routing_kernel(x_ref, w_ref, c_ref, *, iter_routing):
    """Dynamic routing for one batch tile.

    x_ref: (Bt, C, K, H) encoder output tile
    w_ref: (H, H)        nn.Linear weight (out_features, in_features), no bias
    c_ref: (Bt, C*H)     routed capsules, lane-dense layout
    """
    x = x_ref[...]
    w = w_ref[...]
    Bt, C, K, H = x.shape

    # encoder_output_hat = l_1(encoder_output) = x @ W^T, as a single 2-D MXU
    # dot over the flattened rows (leading-dim collapse only; K == sublane
    # tile keeps the layout intact).  Hoisted out of the routing loop.
    hat = lax.dot_general(
        x.reshape(Bt * C * K, H), w,
        dimension_numbers=(((1,), (1,)), ((), ())),
        preferred_element_type=jnp.float32,
    ).reshape(Bt, C, K, H)

    # Iteration 0: b == 0, so softmax(b) is the constant 1/K and the weighted
    # sum collapses to a plain mean over K (no exp / softmax needed).
    c = _squash(jnp.mean(hat, axis=2))                        # (Bt, C, H)

    if iter_routing > 1:
        # b after iteration 0 (b starts at zero) is exactly the agreement term.
        # Agreement / c_hat reductions stay as VPU multiply + XLU reduce
        # (K and H are tiny; no point pushing them onto the MXU).
        b = jnp.sum(hat * c[:, :, None, :], axis=-1)          # (Bt, C, K)
        for it in range(1, iter_routing):
            b_max = jnp.max(b, axis=-1, keepdims=True)
            e = jnp.exp(b - b_max)
            d = e / jnp.sum(e, axis=-1, keepdims=True)        # (Bt, C, K)
            c = _squash(jnp.sum(hat * d[..., None], axis=2))  # (Bt, C, H)
            if it < iter_routing - 1:
                # Final-iteration b is never read again -> skip the update.
                b = b + jnp.sum(hat * c[:, :, None, :], axis=-1)

    # Lane-dense store: pack C capsules of width H into one C*H-wide row
    # (= 128 lanes for C=4, H=32) instead of masked 32-lane partial stores.
    c_flat = jnp.concatenate([c[:, ci, :] for ci in range(C)], axis=-1)
    c_ref[...] = c_flat.astype(c_ref.dtype)


def dynamic_routing_batched(encoder_output, weight, iter_routing=3, block_b=8):
    """encoder_output: (B, C, K, H), weight: (H, H) -> (B, C, H)."""
    B, C, K, H = encoder_output.shape
    block_b = min(block_b, B)
    assert B % block_b == 0, "batch must be divisible by block_b"

    kernel = functools.partial(_routing_kernel, iter_routing=iter_routing)

    # Advisory cost hint for XLA scheduling of this tiny custom call.
    flops = 2 * B * C * K * H * H + (2 * iter_routing - 1) * 2 * B * C * K * H
    cost = pl.CostEstimate(
        flops=flops,
        transcendentals=(iter_routing - 1) * B * C * K,
        bytes_accessed=(encoder_output.size + weight.size + B * C * H) * 4,
    )

    out_flat = pl.pallas_call(
        kernel,
        out_shape=jax.ShapeDtypeStruct((B, C * H), encoder_output.dtype),
        grid=(B // block_b,),
        in_specs=[
            pl.BlockSpec((block_b, C, K, H), lambda i: (i, 0, 0, 0)),
            pl.BlockSpec((H, H), lambda i: (0, 0)),
        ],
        out_specs=pl.BlockSpec((block_b, C * H), lambda i: (i, 0)),
        compiler_params=pltpu.CompilerParams(
            dimension_semantics=("parallel",)),
        cost_estimate=cost,
    )(encoder_output, weight)
    return out_flat.reshape(B, C, H)


def dynamic_routing(encoder_output, weight, iter_routing=3):
    """Module-equivalent forward: (C, K, H) -> (C, H)."""
    return dynamic_routing_batched(encoder_output[None], weight,
                                   iter_routing=iter_routing, block_b=1)[0]


def dynamic_routing_ref(encoder_output, weight, iter_routing=3):
    # Pure-JAX reference mirroring the PyTorch forward verbatim.
    C, K, H = encoder_output.shape
    b = jnp.zeros((C, K), jnp.float32)
    c = None
    for _ in range(iter_routing):
        d = jax.nn.softmax(b, axis=-1)
        hat = jnp.einsum("ckh,oh->cko", encoder_output, weight,
                         precision=lax.Precision.HIGHEST)
        c_hat = jnp.sum(hat * d[..., None], axis=1)
        c = _squash(c_hat)
        b = b + jnp.einsum("ckh,ch->ck", hat, c,
                           precision=lax.Precision.HIGHEST)
    return c


if __name__ == "__main__":
    key = jax.random.PRNGKey(0)
    k_x, k_w, k_xb = jax.random.split(key, 3)

    C, K, H = 4, 8, 32   # (capsule groups, routing slots, hidden_size)
    B = 16               # batch for the gridded / parallel variant

    encoder_output = jax.random.normal(k_x, (C, K, H), dtype=jnp.float32)
    # nn.Linear(H, H, bias=False) weight ~ U(-1/sqrt(H), 1/sqrt(H))
    bound = 1.0 / (H ** 0.5)
    weight = jax.random.uniform(k_w, (H, H), minval=-bound, maxval=bound,
                                dtype=jnp.float32)

    # Module-equivalent single-sample forward.
    c_out = jax.block_until_ready(dynamic_routing(encoder_output, weight, 3))
    c_ref = dynamic_routing_ref(encoder_output, weight, 3)
    assert c_out.shape == (C, H)
    # Tolerance covers possible MXU pass-count differences between the Mosaic
    # f32 dot and the HIGHEST-precision XLA reference.
    assert jnp.allclose(c_out, c_ref, atol=5e-3, rtol=5e-3), "single mismatch"

    # Batched forward: grid over B, parallel semantics (both TCs on megacore).
    xb = jax.random.normal(k_xb, (B, C, K, H), dtype=jnp.float32)
    cb = jax.block_until_ready(dynamic_routing_batched(xb, weight, 3, block_b=8))
    cb_ref = jax.vmap(lambda e: dynamic_routing_ref(e, weight, 3))(xb)
    assert cb.shape == (B, C, H)
    assert jnp.allclose(cb, cb_ref, atol=5e-3, rtol=5e-3), "batched mismatch"

    print("KERNEL_OK")
</pallas_src>

<mosaic_0001>
module attributes {stable_mosaic.version = 11 : i64} {
  func.func @_routing_kernel(%arg0: i32, %arg1: memref<1x4x8x32xf32, #tpu.memory_space<vmem>>, %arg2: memref<32x32xf32, #tpu.memory_space<vmem>>, %arg3: memref<1x128xf32, #tpu.memory_space<vmem>>) attributes {dimension_semantics = [#tpu.dimension_semantics<parallel>], iteration_bounds = array<i64: 1>, scalar_prefetch = 0 : i64, scratch_operands = 0 : i64, tpu.core_type = #tpu.core_type<tc>, window_params = [{transform_indices = @transform_0, window_bounds = array<i64: 1, 4, 8, 32>}, {pipeline_mode = #tpu.pipeline_mode<synchronous>, transform_indices = @transform_1, window_bounds = array<i64: 32, 32>}, {transform_indices = @transform_2, window_bounds = array<i64: 1, 128>}]} {
    %c0 = arith.constant 0 : index
    %c0_0 = arith.constant 0 : index
    %c0_1 = arith.constant 0 : index
    %c0_2 = arith.constant 0 : index
    %0 = vector.load %arg1[%c0, %c0_0, %c0_1, %c0_2] : memref<1x4x8x32xf32, #tpu.memory_space<vmem>>, vector<1x4x8x32xf32>
    %c0_3 = arith.constant 0 : index
    %c0_4 = arith.constant 0 : index
    %1 = vector.load %arg2[%c0_3, %c0_4] : memref<32x32xf32, #tpu.memory_space<vmem>>, vector<32x32xf32>
    %2 = vector.shape_cast %0 : vector<1x4x8x32xf32> to vector<32x32xf32>
    %cst = arith.constant dense<0.000000e+00> : vector<32x32xf32>
    %3 = tpu.matmul %2, %1, %cst {dimension_numbers = #tpu.dot_dimension_numbers<[1], [1], [0], [0], [0, 0, 1, 0], [], []>} : vector<32x32xf32>, vector<32x32xf32>, vector<32x32xf32> -> vector<32x32xf32>
    %4 = vector.shape_cast %3 : vector<32x32xf32> to vector<1x4x8x32xf32>
    %cst_5 = arith.constant dense<0.000000e+00> : vector<1x4x32xf32>
    %5 = vector.multi_reduction <add>, %4, %cst_5 [2] : vector<1x4x8x32xf32> to vector<1x4x32xf32>
    %cst_6 = arith.constant 8.000000e+00 : f32
    %6 = vector.broadcast %cst_6 : f32 to vector<1x4x32xf32>
    %7 = arith.divf %5, %6 : vector<1x4x32xf32>
    %8 = arith.mulf %7, %7 : vector<1x4x32xf32>
    %cst_7 = arith.constant dense<0.000000e+00> : vector<1x4xf32>
    %9 = vector.multi_reduction <add>, %8, %cst_7 [2] : vector<1x4x32xf32> to vector<1x4xf32>
    %10 = vector.shape_cast %9 : vector<1x4xf32> to vector<1x4x1xf32>
    %cst_8 = arith.constant 1.000000e+00 : f32
    %11 = vector.broadcast %cst_8 : f32 to vector<1x4x1xf32>
    %12 = arith.addf %11, %10 : vector<1x4x1xf32>
    %13 = arith.divf %10, %12 : vector<1x4x1xf32>
    %14 = vector.broadcast %13 : vector<1x4x1xf32> to vector<1x4x32xf32>
    %15 = arith.mulf %14, %7 : vector<1x4x32xf32>
    %cst_9 = arith.constant 9.99999993E-9 : f32
    %16 = vector.broadcast %cst_9 : f32 to vector<1x4x1xf32>
    %17 = arith.addf %10, %16 : vector<1x4x1xf32>
    %18 = math.rsqrt %17 : vector<1x4x1xf32>
    %19 = vector.broadcast %18 : vector<1x4x1xf32> to vector<1x4x32xf32>
    %20 = arith.mulf %15, %19 : vector<1x4x32xf32>
    %21 = vector.shape_cast %20 : vector<1x4x32xf32> to vector<1x4x1x32xf32>
    %22 = vector.broadcast %21 : vector<1x4x1x32xf32> to vector<1x4x8x32xf32>
    %23 = arith.mulf %4, %22 : vector<1x4x8x32xf32>
    %cst_10 = arith.constant dense<0.000000e+00> : vector<1x4x8xf32>
    %24 = vector.multi_reduction <add>, %23, %cst_10 [3] : vector<1x4x8x32xf32> to vector<1x4x8xf32>
    %cst_11 = arith.constant dense<0xFF800000> : vector<1x4xf32>
    %25 = vector.multi_reduction <maximumf>, %24, %cst_11 [2] : vector<1x4x8xf32> to vector<1x4xf32>
    %26 = vector.shape_cast %25 : vector<1x4xf32> to vector<1x4x1xf32>
    %27 = vector.broadcast %26 : vector<1x4x1xf32> to vector<1x4x8xf32>
    %28 = arith.subf %24, %27 : vector<1x4x8xf32>
    %29 = math.exp %28 : vector<1x4x8xf32>
    %cst_12 = arith.constant dense<0.000000e+00> : vector<1x4xf32>
    %30 = vector.multi_reduction <add>, %29, %cst_12 [2] : vector<1x4x8xf32> to vector<1x4xf32>
    %31 = vector.shape_cast %30 : vector<1x4xf32> to vector<1x4x1xf32>
    %32 = vector.broadcast %31 : vector<1x4x1xf32> to vector<1x4x8xf32>
    %33 = arith.divf %29, %32 : vector<1x4x8xf32>
    %34 = vector.shape_cast %33 : vector<1x4x8xf32> to vector<1x4x8x1xf32>
    %35 = vector.broadcast %34 : vector<1x4x8x1xf32> to vector<1x4x8x32xf32>
    %36 = arith.mulf %4, %35 : vector<1x4x8x32xf32>
    %cst_13 = arith.constant dense<0.000000e+00> : vector<1x4x32xf32>
    %37 = vector.multi_reduction <add>, %36, %cst_13 [2] : vector<1x4x8x32xf32> to vector<1x4x32xf32>
    %38 = arith.mulf %37, %37 : vector<1x4x32xf32>
    %cst_14 = arith.constant dense<0.000000e+00> : vector<1x4xf32>
    %39 = vector.multi_reduction <add>, %38, %cst_14 [2] : vector<1x4x32xf32> to vector<1x4xf32>
    %40 = vector.shape_cast %39 : vector<1x4xf32> to vector<1x4x1xf32>
    %cst_15 = arith.constant 1.000000e+00 : f32
    %41 = vector.broadcast %cst_15 : f32 to vector<1x4x1xf32>
    %42 = arith.addf %41, %40 : vector<1x4x1xf32>
    %43 = arith.divf %40, %42 : vector<1x4x1xf32>
    %44 = vector.broadcast %43 : vector<1x4x1xf32> to vector<1x4x32xf32>
    %45 = arith.mulf %44, %37 : vector<1x4x32xf32>
    %cst_16 = arith.constant 9.99999993E-9 : f32
    %46 = vector.broadcast %cst_16 : f32 to vector<1x4x1xf32>
    %47 = arith.addf %40, %46 : vector<1x4x1xf32>
    %48 = math.rsqrt %47 : vector<1x4x1xf32>
    %49 = vector.broadcast %48 : vector<1x4x1xf32> to vector<1x4x32xf32>
    %50 = arith.mulf %45, %49 : vector<1x4x32xf32>
    %51 = vector.shape_cast %50 : vector<1x4x32xf32> to vector<1x4x1x32xf32>
    %52 = vector.broadcast %51 : vector<1x4x1x32xf32> to vector<1x4x8x32xf32>
    %53 = arith.mulf %4, %52 : vector<1x4x8x32xf32>
    %cst_17 = arith.constant dense<0.000000e+00> : vector<1x4x8xf32>
    %54 = vector.multi_reduction <add>, %53, %cst_17 [3] : vector<1x4x8x32xf32> to vector<1x4x8xf32>
    %55 = arith.addf %24, %54 : vector<1x4x8xf32>
    %cst_18 = arith.constant dense<0xFF800000> : vector<1x4xf32>
    %56 = vector.multi_reduction <maximumf>, %55, %cst_18 [2] : vector<1x4x8xf32> to vector<1x4xf32>
    %57 = vector.shape_cast %56 : vector<1x4xf32> to vector<1x4x1xf32>
    %58 = vector.broadcast %57 : vector<1x4x1xf32> to vector<1x4x8xf32>
    %59 = arith.subf %55, %58 : vector<1x4x8xf32>
    %60 = math.exp %59 : vector<1x4x8xf32>
    %cst_19 = arith.constant dense<0.000000e+00> : vector<1x4xf32>
    %61 = vector.multi_reduction <add>, %60, %cst_19 [2] : vector<1x4x8xf32> to vector<1x4xf32>
    %62 = vector.shape_cast %61 : vector<1x4xf32> to vector<1x4x1xf32>
    %63 = vector.broadcast %62 : vector<1x4x1xf32> to vector<1x4x8xf32>
    %64 = arith.divf %60, %63 : vector<1x4x8xf32>
    %65 = vector.shape_cast %64 : vector<1x4x8xf32> to vector<1x4x8x1xf32>
    %66 = vector.broadcast %65 : vector<1x4x8x1xf32> to vector<1x4x8x32xf32>
    %67 = arith.mulf %4, %66 : vector<1x4x8x32xf32>
    %cst_20 = arith.constant dense<0.000000e+00> : vector<1x4x32xf32>
    %68 = vector.multi_reduction <add>, %67, %cst_20 [2] : vector<1x4x8x32xf32> to vector<1x4x32xf32>
    %69 = arith.mulf %68, %68 : vector<1x4x32xf32>
    %cst_21 = arith.constant dense<0.000000e+00> : vector<1x4xf32>
    %70 = vector.multi_reduction <add>, %69, %cst_21 [2] : vector<1x4x32xf32> to vector<1x4xf32>
    %71 = vector.shape_cast %70 : vector<1x4xf32> to vector<1x4x1xf32>
    %cst_22 = arith.constant 1.000000e+00 : f32
    %72 = vector.broadcast %cst_22 : f32 to vector<1x4x1xf32>
    %73 = arith.addf %72, %71 : vector<1x4x1xf32>
    %74 = arith.divf %71, %73 : vector<1x4x1xf32>
    %75 = vector.broadcast %74 : vector<1x4x1xf32> to vector<1x4x32xf32>
    %76 = arith.mulf %75, %68 : vector<1x4x32xf32>
    %cst_23 = arith.constant 9.99999993E-9 : f32
    %77 = vector.broadcast %cst_23 : f32 to vector<1x4x1xf32>
    %78 = arith.addf %71, %77 : vector<1x4x1xf32>
    %79 = math.rsqrt %78 : vector<1x4x1xf32>
    %80 = vector.broadcast %79 : vector<1x4x1xf32> to vector<1x4x32xf32>
    %81 = arith.mulf %76, %80 : vector<1x4x32xf32>
    %82 = vector.extract_strided_slice %81 {offsets = [0, 0, 0], sizes = [1, 1, 32], strides = [1, 1, 1]} : vector<1x4x32xf32> to vector<1x1x32xf32>
    %83 = vector.shape_cast %82 : vector<1x1x32xf32> to vector<1x32xf32>
    %84 = vector.extract_strided_slice %81 {offsets = [0, 1, 0], sizes = [1, 1, 32], strides = [1, 1, 1]} : vector<1x4x32xf32> to vector<1x1x32xf32>
    %85 = vector.shape_cast %84 : vector<1x1x32xf32> to vector<1x32xf32>
    %86 = vector.extract_strided_slice %81 {offsets = [0, 2, 0], sizes = [1, 1, 32], strides = [1, 1, 1]} : vector<1x4x32xf32> to vector<1x1x32xf32>
    %87 = vector.shape_cast %86 : vector<1x1x32xf32> to vector<1x32xf32>
    %88 = vector.extract_strided_slice %81 {offsets = [0, 3, 0], sizes = [1, 1, 32], strides = [1, 1, 1]} : vector<1x4x32xf32> to vector<1x1x32xf32>
    %89 = vector.shape_cast %88 : vector<1x1x32xf32> to vector<1x32xf32>
    %90 = tpu.concatenate %83, %85, %87, %89 in 1 : vector<1x32xf32>, vector<1x32xf32>, vector<1x32xf32>, vector<1x32xf32> -> vector<1x128xf32>
    %c0_24 = arith.constant 0 : index
    %c0_25 = arith.constant 0 : index
    %91 = vector.load %arg3[%c0_24, %c0_25] : memref<1x128xf32, #tpu.memory_space<vmem>>, vector<1x128xf32>
    tpu.vector_store %arg3[%c0_24, %c0_25], %90 {strides = array<i32>} : memref<1x128xf32, #tpu.memory_space<vmem>>, vector<1x128xf32>,
    return
  }
  func.func @transform_0(%arg0: i32) -> (i32, i32, i32, i32) {
    %c0_i32 = arith.constant 0 : i32
    %c0_i32_0 = arith.constant 0 : i32
    %c0_i32_1 = arith.constant 0 : i32
    %c0_i32_2 = arith.constant 0 : i32
    return %arg0, %c0_i32, %c0_i32_0, %c0_i32_1 : i32, i32, i32, i32
  }
  func.func @transform_1(%arg0: i32) -> (i32, i32) {
    %c0_i32 = arith.constant 0 : i32
    %c0_i32_0 = arith.constant 0 : i32
    %c0_i32_1 = arith.constant 0 : i32
    return %c0_i32, %c0_i32_0 : i32, i32
  }
  func.func @transform_2(%arg0: i32) -> (i32, i32) {
    %c0_i32 = arith.constant 0 : i32
    %c0_i32_0 = arith.constant 0 : i32
    return %arg0, %c0_i32 : i32, i32
  }
}

</mosaic_0001>

<bundles_post_ra>
// kernel: tpu_custom_call.1
= control target key start
LH: loop header
LB: loop body
LE: loop exit
PB: predicated region body
PF: predicated region fallthrough
CT: control target
= control target key end

     0   :  { %7 = vsyncpa [#allocation3], 0  ;;  %s1234_s0 = inlined_call_operand.hbm [shape: f32[1,4,8,32], index: 0, kind: input, shape index: {}]   ;;  %s1235_s1 = inlined_call_operand.hbm [shape: f32[32,32], index: 1, kind: input, shape index: {}]   ;;  %s1236_s2 = inlined_call_operand.hbm [shape: f32[1,128], index: 2, kind: output, shape index: {}]  }
   0x1   :  { %8 = vsyncpa [#allocation6], 0 }
   0x2   :  { %9 = vsyncpa [#allocation4], 0  ;;  %s983_s9 = smov [#allocation2]   ;;  %s911_s13 = scalar_lea.hbm %s1234_s0, 512 }
   0x3   :  { %s15_s10 = sshll.u32 %s983_s9, 4  ;;  %p912_p0 = scmp.ne.s32.totalorder %s1234_s0, %s911_s13  ;;  %s16_s10 = int_to_ptr.vmem [resolvable:$true] %s15_s10 }
   0x4   :  { %p915_p1 = scmp.lt.u32.totalorder %s911_s13, %s1234_s0 }
   0x6   :  { %p917_p2 = pnand %p915_p1, %p912_p0 }
   0x8   :  { %920 = shalt.err (!%p917_p2)
}
   0x9   :  { %s921_s18 = scalar_lea.vmem %s16_s10, 512  ;;  %p926_p4 = scmp.lt.s32.totalorder %s16_s10, %s16_s10 }
   0xa   :  { %p922_p3 = scmp.ne.s32.totalorder %s16_s10, %s921_s18  ;;  %p927_p5 = scmp.lt.s32.totalorder %s921_s18, %s921_s18 }
   0xc   :  { %p928_p6 = por %p927_p5, %p926_p4 }
   0xe   :  { %p929_p7 = pnand %p928_p6, %p922_p3 }
  0x10   :  { %932 = shalt.err (!%p929_p7)
}
  0x11   :  { %s984_s19 = smov 128   ;;  %s985_s20 = smov 8  }
  0x12   :  { %21 = dma.hbm_to_vmem [thread:$0]  %s1234_s0, 512, %s16_s10, [#allocation3], %s984_s19, %s984_s19, %s985_s20  }
  0x13   :  { %s986_s23 = smov [#allocation5]   ;;  %s933_s27 = scalar_lea.hbm %s1235_s1, 512 }
  0x14   :  { %s27_s24 = sshll.u32 %s986_s23, 4  ;;  %p934_p8 = scmp.ne.s32.totalorder %s1235_s1, %s933_s27  ;;  %s28_s24 = int_to_ptr.vmem [resolvable:$true] %s27_s24 }
  0x15   :  { %p937_p9 = scmp.lt.u32.totalorder %s933_s27, %s1235_s1 }
  0x17   :  { %p939_p10 = pnand %p937_p9, %p934_p8 }
  0x19   :  { %942 = shalt.err (!%p939_p10)
}
  0x1a   :  { %s943_s4 = scalar_lea.vmem %s28_s24, 512  ;;  %p948_p12 = scmp.lt.s32.totalorder %s28_s24, %s28_s24 }
  0x1b   :  { %p944_p11 = scmp.ne.s32.totalorder %s28_s24, %s943_s4  ;;  %p949_p13 = scmp.lt.s32.totalorder %s943_s4, %s943_s4 }
  0x1d   :  { %p950_p0 = por %p949_p13, %p948_p12 }
  0x1f   :  { %p951_p1 = pnand %p950_p0, %p944_p11 }
  0x21   :  { %954 = shalt.err (!%p951_p1)
}
  0x22   :  { %33 = dma.hbm_to_vmem [thread:$0]  %s1235_s1, 512, %s28_s24, [#allocation6], %s984_s19, %s984_s19, %s985_s20  }
  0x23   :  { %977 = dma.done.wait [#allocation3], 512  }
  0x24   :  { %978 = vsyncadd [#allocation3], 4294966784 }
  0x25   :  { %979 = dma.done.wait [#allocation6], 512  }
  0x26   :  { %980 = vsyncadd [#allocation6], 4294966784  ;;  %vm48_vm0 = vcmask 261120   ;;  %v44_v1 = vld [vmem:[#allocation5] sm:$0xff]  ;;  %v45_v2 = vld [vmem:[#allocation5 + $0x8] sm:$0xff]  ;;  %vm199_vm2 = vcmask 1041409   ;;  %v229_v63 = vlaneseq }
  0x27   :  { %vm1034_vm1 = vmpackc.low %vm48_vm0, %vm48_vm0  ;;  %v46_v3 = vld [vmem:[#allocation5 + $0x10] sm:$0xff]  ;;  %v839_v4 = vpack.c.bf16 %v45_v2, %v44_v1  ;;  %v47_v5 = vld [vmem:[#allocation5 + $0x18] sm:$0xff]  ;;  %vm201_vm3 = vcmask 1042434   ;;  %vm203_vm4 = vcmask 1043459   ;;  %vm206_vm5 = vcmask 257024   ;;  %s989_s1 = smov 96  }
  0x28   :  { %v40_v6 = vld [vmem:[#allocation2] sm:$0xff]  ;;  %v42_v7 = vld [vmem:[#allocation2 + $0x10] sm:$0xff]  ;;  %v845_v8 = vpack.c.bf16 %v47_v5, %v46_v3  ;;  %v41_v9 = vld [vmem:[#allocation2 + $0x8] sm:$0xff]  ;;  %v987_v61 = vmov 1966171168   ;;  %v230_v1 = vshrl.u32 %v229_v63, 7 }
  0x29   :  { %833 = vmatprep.mubr.msk.f32.mxu0 %vm48_vm0, %v40_v6  ;;  %836 = vmatprep.mubr.msk.f32.mxu1 %vm48_vm0, %v42_v7  ;;  %v43_v10 = vld [vmem:[#allocation2 + $0x18] sm:$0xff]  ;;  %v227_v62 = vunpack.c.l.s4 %v987_v61  ;;  %vm312_vm6 = vcmask 60416   ;;  %s990_s6 = smov 32   ;;  %s991_s7 = smov 64   ;;  %vm788_vm7 = vcmask 523264   ;;  %vm790_vm8 = vcmask 785408  }
  0x2a   :  { %841 = vmatprep.subr.msk.bf16.mxu0 %vm1034_vm1, %v839_v4  ;;  %851 = vmatprep.subr.msk.bf16.mxu1 %vm1034_vm1, %v839_v4  ;;  %s992_s8 = smov [#allocation7]  }
  0x2b   :  { %844 = vmatpush3.bf16.xpose.msk.msra.mxu0 %vm1034_vm1, %v839_v4  ;;  %853 = vmatpush3.bf16.xpose.msk.msra.mxu1 %vm1034_vm1, %v839_v4  ;;  %v228_v0 = vunpack.c.0.s8 %v227_v62  ;;  %s799_s9 = sshll.u32 %s992_s8, 4  ;;  %s800_s9 = int_to_ptr.vmem [resolvable:$true] %s799_s9 }
  0x2c   :  { %847 = vmatprep.subr.msk.bf16.mxu0 %vm1034_vm1, %v845_v8  ;;  %852 = vmatprep.subr.msk.bf16.mxu1 %vm1034_vm1, %v845_v8  ;;  %s955_s10 = scalar_lea.vmem %s800_s9, 16  ;;  %s959_s11 = scalar_lea.vmem %s800_s9, 32 }
  0x2d   :  { %v1081_v5 = vsub.s32 %v228_v0, %v230_v1  ;;  %p956_p2 = scmp.ne.s32.totalorder %s800_s9, %s955_s10  ;;  %p960_p3 = scmp.lt.s32.totalorder %s800_s9, %s800_s9 }
  0x2e   :  { %p961_p4 = scmp.lt.s32.totalorder %s959_s11, %s955_s10 }
  0x30   :  { %p962_p5 = por %p961_p4, %p960_p3 }
  0x32   :  { %p963_p6 = pnand %p962_p5, %p956_p2 }
  0x33   :  { %850 = vmatpush3.bf16.xpose.msk.msra.mxu0 %vm1034_vm1, %v845_v8  ;;  %854 = vmatpush3.bf16.xpose.msk.msra.mxu1 %vm1034_vm1, %v845_v8 }
  0x3a   :  { %834 = vmatmul.mubr.msk.f32.vlgmr.msra.gmra.mrb[0].mxu0 %vm48_vm0, %v41_v9  ;;  %837 = vmatmul.mubr.msk.f32.vlgmr.msra.gmra.mrb[0].mxu1 %vm48_vm0, %v43_v10  ;;  %v1084_v9 = vsub.s32 0, %v230_v1 }
 0x10d   :  { %v1058_v11 = vpop.f32.mrb[0].mxu0  ;;  %v1060_v12 = vpop.f32.mrb[0].mxu1 }
 0x10e   :  { %v165_v13 = vsel %vm48_vm0, %v1058_v11, 0.0  ;;  %v179_v14 = vsel %vm48_vm0, %v1060_v12, 0.0  ;;  %v1066_v15 = vpop.f32.mrb[1].mxu0  ;;  %v1068_v16 = vpop.f32.mrb[1].mxu1 }
 0x10f   :  { %v166_v17 = vrot.slane %v165_v13, 4  ;;  %v180_v18 = vrot.slane %v179_v14, 4  ;;  %v158_v19 = vsel %vm48_vm0, %v1066_v15, 0.0  ;;  %v172_v20 = vsel %vm48_vm0, %v1068_v16, 0.0 }
 0x110   :  { %v159_v21 = vrot.slane %v158_v19, 4  ;;  %v173_v22 = vrot.slane %v172_v20, 4 }
 0x111   :  { %v167_v23 = vadd.f32 %v166_v17, %v165_v13  ;;  %v181_v24 = vadd.f32 %v180_v18, %v179_v14 }
 0x112   :  { %v160_v25 = vadd.f32 %v159_v21, %v158_v19  ;;  %v174_v26 = vadd.f32 %v173_v22, %v172_v20 }
 0x113   :  { %v168_v27 = vrot.slane %v167_v23, 2  ;;  %v182_v28 = vrot.slane %v181_v24, 2 }
 0x114   :  { %v161_v29 = vrot.slane %v160_v25, 2  ;;  %v175_v30 = vrot.slane %v174_v26, 2 }
 0x115   :  { %v169_v31 = vadd.f32 %v168_v27, %v167_v23  ;;  %v183_v32 = vadd.f32 %v182_v28, %v181_v24 }
 0x116   :  { %v162_v33 = vadd.f32 %v161_v29, %v160_v25  ;;  %v176_v34 = vadd.f32 %v175_v30, %v174_v26 }
 0x117   :  { %v170_v35 = vrot.slane %v169_v31, 1  ;;  %v184_v36 = vrot.slane %v183_v32, 1 }
 0x118   :  { %v163_v37 = vrot.slane %v162_v33, 1  ;;  %v177_v38 = vrot.slane %v176_v34, 1 }
 0x119   :  { %v171_v39 = vadd.f32 %v170_v35, %v169_v31  ;;  %v185_v40 = vadd.f32 %v184_v36, %v183_v32  ;;  %v291_v31 = vand.u32 127, %v229_v63 }
 0x11a   :  { %v164_v41 = vadd.f32 %v163_v37, %v162_v33  ;;  %v178_v42 = vadd.f32 %v177_v38, %v176_v34 }
 0x11b   :  { %v188_v43 = vmul.f32 0.125, %v171_v39  ;;  %v190_v46 = vmul.f32 0.125, %v185_v40  ;;  %v1102_v33 = vsub.s32 %v291_v31, %v230_v1 }
 0x11c   :  { %v187_v44 = vmul.f32 0.125, %v164_v41  ;;  %v189_v45 = vmul.f32 0.125, %v178_v42 }
 0x11d   :  { %v192_v47 = vmul.f32 %v188_v43, %v188_v43  ;;  %v194_v52 = vmul.f32 %v190_v46, %v190_v46 }
 0x11e   :  { %v191_v48 = vmul.f32 %v187_v44, %v187_v44  ;;  %v193_v49 = vmul.f32 %v189_v45, %v189_v45  ;;  %v217_v50 = vsel %vm199_vm2, %v188_v43, %v187_v44 }
 0x11f   :  { %v218_v51 = vsel %vm201_vm3, %v189_v45, %v217_v50  ;;  %v988_v45 = vmov 0  }
 0x120   :  { %v200_v53 = vsel %vm199_vm2, %v192_v47, %v191_v48  ;;  %v219_v54 = vsel %vm203_vm4, %v190_v46, %v218_v51  ;;  %866 = vset.pattern.permute.xlu1 %v988_v45  ;;  %865 = vset.pattern.permute.xlu0 %v988_v45  ;;  %v1122_v46 = vsub.s32 1, %v230_v1  ;;  %v1124_v47 = vsub.s32 2, %v230_v1 }
 0x121   :  { %v202_v55 = vsel %vm201_vm3, %v193_v49, %v200_v53  ;;  %v1126_v48 = vsub.s32 3, %v230_v1 }
 0x122   :  { %v204_v56 = vsel %vm203_vm4, %v194_v52, %v202_v55 }
 0x123   :  { %v207_v57 = vsel %vm206_vm5, %v204_v56, 0.0 }
 0x124   :  { %208 = vadd.xlane.f32.xlu0 %v207_v57 }
 0x1b1   :  { %v209_v58 = vpop.xlane.xlu0 %208 }
 0x1b2   :  { %v210_v59 = vadd.f32 1.0, %v209_v58  ;;  %v222_v60 = vadd.f32 1e-08, %v209_v58 }
 0x1b4   :  { %867 = vrcp.f32 %v210_v59 }
 0x1b5   :  { %869 = vrsqrt.f32 %v222_v60 }
 0x1be   :  { %v868_v2 = vpop.eup %867 }
 0x1bf   :  { %v212_v3 = vmul.f32 %v868_v2, %v209_v58  ;;  %v870_v6 = vpop.eup %869 }
 0x1c1   :  { %v221_v4 = vmul.f32 %v219_v54, %v212_v3 }
 0x1c3   :  { %v224_v7 = vmul.f32 %v870_v6, %v221_v4 }
 0x1c5   :  { %v232_v8 = vrot.slane %v224_v7, %v1081_v5 }
 0x1c7   :  { %v240_v10 = vrot.slane %v232_v8, %v1081_v5  ;;  %v233_v13 = vcombine.high %v232_v8, %v232_v8 }
 0x1c9   :  { %v253_v14 = vrot.slane %v240_v10, %v1084_v9  ;;  %v247_v17 = vrot.slane %v233_v13, %v1081_v5  ;;  %v248_v18 = vcombine.high %v240_v10, %v240_v10 }
 0x1cb   :  { %v270_v19 = vmul.f32 %v253_v14, %v1066_v15  ;;  %v257_v20 = vrot.slane %v247_v17, %v1084_v9  ;;  %v249_v21 = vcombine.high %v247_v17, %v247_v17  ;;  %v261_v22 = vrot.slane %v248_v18, %v1084_v9 }
 0x1cd   :  { %v274_v23 = vsel %vm48_vm0, %v270_v19, 0.0  ;;  %v271_v24 = vmul.f32 %v1058_v11, %v257_v20  ;;  %v265_v25 = vrot.slane %v249_v21, %v1084_v9  ;;  %v272_v26 = vmul.f32 %v261_v22, %v1068_v16 }
 0x1ce   :  { %275 = vadd.xlane.f32.xlu0 %v274_v23 }
 0x1cf   :  { %v277_v27 = vsel %vm48_vm0, %v271_v24, 0.0  ;;  %v273_v28 = vmul.f32 %v1060_v12, %v265_v25  ;;  %v280_v30 = vsel %vm48_vm0, %v272_v26, 0.0 }
 0x1d0   :  { %278 = vadd.xlane.f32.xlu1 %v277_v27 }
 0x1d1   :  { %v283_v29 = vsel %vm48_vm0, %v273_v28, 0.0 }
 0x1d2   :  { %284 = vadd.xlane.f32.xlu0 %v283_v29 }
 0x1d4   :  { %281 = vadd.xlane.f32.xlu1 %v280_v30 }
 0x25b   :  { %v1100_v32 = vpop.xlane.xlu0 %275 }
 0x25c   :  { %v295_v37 = vrot.slane %v1100_v32, %v1102_v33 }
 0x25d   :  { %v1104_v34 = vpop.xlane.xlu1 %278 }
 0x25e   :  { %v299_v35 = vrot.slane %v1104_v34, %v1102_v33 }
 0x25f   :  { %v1108_v36 = vpop.xlane.xlu0 %284 }
 0x260   :  { %v307_v40 = vrot.slane %v1108_v36, %v1102_v33  ;;  %v308_v41 = vsel %vm199_vm2, %v299_v35, %v295_v37 }
 0x261   :  { %v1112_v38 = vpop.xlane.xlu1 %281 }
 0x262   :  { %v303_v39 = vrot.slane %v1112_v38, %v1102_v33 }
 0x264   :  { %v309_v42 = vsel %vm201_vm3, %v303_v39, %v308_v41 }
 0x265   :  { %v310_v43 = vsel %vm203_vm4, %v307_v40, %v309_v42 }
 0x266   :  { %v313_v44 = vsel %vm312_vm6, %v310_v43, -inf }
 0x267   :  { %314 = vmax.xlane.f32.xlu1 %v313_v44 }
 0x2f4   :  { %v315_v49 = vpop.xlane.xlu1 %314 }
 0x2f5   :  { %v320_v50 = vrot.slane %v315_v49, %v1084_v9  ;;  %v324_v51 = vrot.slane %v315_v49, %v1122_v46  ;;  %v328_v52 = vrot.slane %v315_v49, %v1124_v47  ;;  %v332_v55 = vrot.slane %v315_v49, %v1126_v48 }
 0x2f7   :  { %v337_v53 = vsub.f32 %v1100_v32, %v320_v50  ;;  %v338_v54 = vsub.f32 %v1104_v34, %v324_v51  ;;  %v339_v56 = vsub.f32 %v1112_v38, %v328_v52  ;;  %v340_v59 = vsub.f32 %v1108_v36, %v332_v55 }
 0x2f9   :  { %v341_v57 = vmul.f32 1.442695, %v337_v53  ;;  %v343_v58 = vmul.f32 1.442695, %v338_v54  ;;  %v345_v60 = vmul.f32 1.442695, %v339_v56 }
 0x2fa   :  { %v347_v61 = vmul.f32 1.442695, %v340_v59 }
 0x2fb   :  { %871 = vpow2.f32 %v341_v57 }
 0x2fc   :  { %873 = vpow2.f32 %v343_v58 }
 0x2fd   :  { %875 = vpow2.f32 %v345_v60 }
 0x2fe   :  { %877 = vpow2.f32 %v347_v61 }
 0x305   :  { %v872_v62 = vpop.eup %871 }
 0x306   :  { %v874_v63 = vpop.eup %873  ;;  %354 = vperm.xlu0 %865, %v872_v62  }
 0x307   :  { %357 = vperm.xlu1 %866, %v874_v63   ;;  %v876_v0 = vpop.eup %875 }
 0x308   :  { %v878_v1 = vpop.eup %877 }
 0x30b   :  { %360 = vperm.xlu1 %866, %v876_v0  }
 0x30f   :  { %363 = vperm.xlu1 %866, %v878_v1  }
 0x385   :  { %v355_v3 = vpop.permute.xlu0 %354 }
 0x386   :  { %v358_v2 = vpop.permute.xlu1 %357  ;;  %v368_v7 = vrot.slane %v355_v3, %v1102_v33 }
 0x387   :  { %v372_v6 = vrot.slane %v358_v2, %v1102_v33 }
 0x389   :  { %v381_v13 = vsel %vm199_vm2, %v372_v6, %v368_v7 }
 0x38a   :  { %v361_v4 = vpop.permute.xlu1 %360 }
 0x38b   :  { %v376_v8 = vrot.slane %v361_v4, %v1102_v33 }
 0x38d   :  { %v382_v17 = vsel %vm201_vm3, %v376_v8, %v381_v13 }
 0x38e   :  { %v364_v10 = vpop.permute.xlu1 %363 }
 0x38f   :  { %v380_v14 = vrot.slane %v364_v10, %v1102_v33 }
 0x391   :  { %v383_v18 = vsel %vm203_vm4, %v380_v14, %v382_v17 }
 0x392   :  { %v385_v19 = vsel %vm312_vm6, %v383_v18, 0.0 }
 0x393   :  { %386 = vadd.xlane.f32.xlu1 %v385_v19 }
 0x420   :  { %v387_v20 = vpop.xlane.xlu1 %386 }
 0x421   :  { %v392_v21 = vrot.slane %v387_v20, %v1084_v9  ;;  %v396_v22 = vrot.slane %v387_v20, %v1122_v46  ;;  %v400_v23 = vrot.slane %v387_v20, %v1124_v47  ;;  %v404_v24 = vrot.slane %v387_v20, %v1126_v48 }
 0x423   :  { %879 = vrcp.f32 %v392_v21 }
 0x424   :  { %881 = vrcp.f32 %v396_v22 }
 0x425   :  { %883 = vrcp.f32 %v400_v23 }
 0x426   :  { %885 = vrcp.f32 %v404_v24 }
 0x42d   :  { %v880_v25 = vpop.eup %879 }
 0x42e   :  { %v410_v26 = vmul.f32 %v880_v25, %v872_v62  ;;  %v882_v27 = vpop.eup %881 }
 0x42f   :  { %v412_v28 = vmul.f32 %v882_v27, %v874_v63  ;;  %v884_v29 = vpop.eup %883 }
 0x430   :  { %419 = vperm.xlu0 %865, %v410_v26   ;;  %v414_v30 = vmul.f32 %v884_v29, %v876_v0  ;;  %v886_v31 = vpop.eup %885 }
 0x431   :  { %v416_v35 = vmul.f32 %v886_v31, %v878_v1 }
 0x434   :  { %424 = vperm.xlu0 %865, %v412_v28  }
 0x438   :  { %429 = vperm.xlu0 %865, %v414_v30  }
 0x43c   :  { %434 = vperm.xlu0 %865, %v416_v35  }
 0x4af   :  { %v420_v37 = vpop.permute.xlu0 %419 }
 0x4b0   :  { %v437_v39 = vmul.f32 %v420_v37, %v1066_v15 }
 0x4b2   :  { %v441_v40 = vsel %vm48_vm0, %v437_v39, 0.0 }
 0x4b3   :  { %v442_v41 = vrot.slane %v441_v40, 4  ;;  %v425_v42 = vpop.permute.xlu0 %424 }
 0x4b4   :  { %v438_v43 = vmul.f32 %v1058_v11, %v425_v42 }
 0x4b5   :  { %v443_v44 = vadd.f32 %v442_v41, %v441_v40 }
 0x4b6   :  { %v448_v45 = vsel %vm48_vm0, %v438_v43, 0.0 }
 0x4b7   :  { %v444_v49 = vrot.slane %v443_v44, 2  ;;  %v449_v50 = vrot.slane %v448_v45, 4  ;;  %v430_v51 = vpop.permute.xlu0 %429 }
 0x4b8   :  { %v439_v52 = vmul.f32 %v430_v51, %v1068_v16 }
 0x4b9   :  { %v445_v53 = vadd.f32 %v444_v49, %v443_v44  ;;  %v450_v54 = vadd.f32 %v449_v50, %v448_v45 }
 0x4ba   :  { %v455_v55 = vsel %vm48_vm0, %v439_v52, 0.0 }
 0x4bb   :  { %v446_v56 = vrot.slane %v445_v53, 1  ;;  %v451_v57 = vrot.slane %v450_v54, 2  ;;  %v456_v58 = vrot.slane %v455_v55, 4  ;;  %v435_v59 = vpop.permute.xlu0 %434 }
 0x4bc   :  { %v440_v60 = vmul.f32 %v1060_v12, %v435_v59 }
 0x4bd   :  { %v452_v61 = vadd.f32 %v451_v57, %v450_v54  ;;  %v457_v62 = vadd.f32 %v456_v58, %v455_v55  ;;  %v447_v63 = vadd.f32 %v446_v56, %v445_v53 }
 0x4be   :  { %v462_v0 = vsel %vm48_vm0, %v440_v60, 0.0 }
 0x4bf   :  { %v453_v1 = vrot.slane %v452_v61, 1  ;;  %v458_v2 = vrot.slane %v457_v62, 2  ;;  %v463_v3 = vrot.slane %v462_v0, 4  ;;  %v469_v8 = vmul.f32 %v447_v63, %v447_v63 }
 0x4c1   :  { %v454_v4 = vadd.f32 %v453_v1, %v452_v61  ;;  %v459_v6 = vadd.f32 %v458_v2, %v457_v62  ;;  %v464_v7 = vadd.f32 %v463_v3, %v462_v0 }
 0x4c3   :  { %v470_v10 = vmul.f32 %v454_v4, %v454_v4  ;;  %v460_v13 = vrot.slane %v459_v6, 1  ;;  %v465_v14 = vrot.slane %v464_v7, 2  ;;  %v491_v17 = vsel %vm199_vm2, %v454_v4, %v447_v63 }
 0x4c5   :  { %v461_v18 = vadd.f32 %v460_v13, %v459_v6  ;;  %v466_v19 = vadd.f32 %v465_v14, %v464_v7  ;;  %v477_v20 = vsel %vm199_vm2, %v470_v10, %v469_v8 }
 0x4c7   :  { %v467_v21 = vrot.slane %v466_v19, 1  ;;  %v471_v22 = vmul.f32 %v461_v18, %v461_v18  ;;  %v492_v23 = vsel %vm201_vm3, %v461_v18, %v491_v17 }
 0x4c9   :  { %v468_v24 = vadd.f32 %v467_v21, %v466_v19  ;;  %v478_v25 = vsel %vm201_vm3, %v471_v22, %v477_v20 }
 0x4cb   :  { %v472_v26 = vmul.f32 %v468_v24, %v468_v24  ;;  %v493_v27 = vsel %vm203_vm4, %v468_v24, %v492_v23 }
 0x4cd   :  { %v479_v28 = vsel %vm203_vm4, %v472_v26, %v478_v25 }
 0x4ce   :  { %v481_v29 = vsel %vm206_vm5, %v479_v28, 0.0 }
 0x4cf   :  { %482 = vadd.xlane.f32.xlu0 %v481_v29 }
 0x55c   :  { %v483_v30 = vpop.xlane.xlu0 %482 }
 0x55d   :  { %v484_v31 = vadd.f32 1.0, %v483_v30  ;;  %v496_v35 = vadd.f32 1e-08, %v483_v30 }
 0x55f   :  { %887 = vrcp.f32 %v484_v31 }
 0x560   :  { %889 = vrsqrt.f32 %v496_v35 }
 0x569   :  { %v888_v37 = vpop.eup %887 }
 0x56a   :  { %v486_v39 = vmul.f32 %v888_v37, %v483_v30  ;;  %v890_v41 = vpop.eup %889 }
 0x56c   :  { %v495_v40 = vmul.f32 %v493_v27, %v486_v39 }
 0x56e   :  { %v498_v42 = vmul.f32 %v890_v41, %v495_v40 }
 0x570   :  { %v506_v43 = vrot.slane %v498_v42, %v1081_v5 }
 0x572   :  { %v514_v44 = vrot.slane %v506_v43, %v1081_v5  ;;  %v507_v45 = vcombine.high %v506_v43, %v506_v43 }
 0x574   :  { %v527_v49 = vrot.slane %v514_v44, %v1084_v9  ;;  %v521_v50 = vrot.slane %v507_v45, %v1081_v5  ;;  %v522_v51 = vcombine.high %v514_v44, %v514_v44 }
 0x576   :  { %v544_v52 = vmul.f32 %v527_v49, %v1066_v15  ;;  %v531_v53 = vrot.slane %v521_v50, %v1084_v9  ;;  %v535_v54 = vrot.slane %v522_v51, %v1084_v9  ;;  %v523_v55 = vcombine.high %v521_v50, %v521_v50 }
 0x578   :  { %v548_v56 = vsel %vm48_vm0, %v544_v52, 0.0  ;;  %v545_v57 = vmul.f32 %v1058_v11, %v531_v53  ;;  %v546_v58 = vmul.f32 %v535_v54, %v1068_v16  ;;  %v539_v59 = vrot.slane %v523_v55, %v1084_v9 }
 0x579   :  { %549 = vadd.xlane.f32.xlu1 %v548_v56 }
 0x57a   :  { %v547_v60 = vmul.f32 %v1060_v12, %v539_v59  ;;  %v551_v5 = vsel %vm48_vm0, %v545_v57, 0.0  ;;  %v554_v61 = vsel %vm48_vm0, %v546_v58, 0.0 }
 0x57c   :  { %v557_v62 = vsel %vm48_vm0, %v547_v60, 0.0 }
 0x57d   :  { %552 = vadd.xlane.f32.xlu1 %v551_v5 }
 0x581   :  { %555 = vadd.xlane.f32.xlu1 %v554_v61 }
 0x585   :  { %558 = vadd.xlane.f32.xlu1 %v557_v62 }
 0x606   :  { %v550_v63 = vpop.xlane.xlu1 %549 }
 0x607   :  { %v560_v3 = vadd.f32 %v550_v63, %v1100_v32 }
 0x609   :  { %v571_v10 = vrot.slane %v560_v3, %v1102_v33 }
 0x60a   :  { %v553_v0 = vpop.xlane.xlu1 %552 }
 0x60b   :  { %v561_v1 = vadd.f32 %v553_v0, %v1104_v34 }
 0x60d   :  { %v575_v6 = vrot.slane %v561_v1, %v1102_v33 }
 0x60e   :  { %v556_v2 = vpop.xlane.xlu1 %555 }
 0x60f   :  { %v562_v4 = vadd.f32 %v556_v2, %v1112_v38  ;;  %v584_v17 = vsel %vm199_vm2, %v575_v6, %v571_v10 }
 0x611   :  { %v579_v7 = vrot.slane %v562_v4, %v1102_v33 }
 0x612   :  { %v559_v8 = vpop.xlane.xlu1 %558 }
 0x613   :  { %v563_v13 = vadd.f32 %v559_v8, %v1108_v36  ;;  %v585_v34 = vsel %vm201_vm3, %v579_v7, %v584_v17 }
 0x615   :  { %v583_v14 = vrot.slane %v563_v13, %v1102_v33 }
 0x617   :  { %v586_v18 = vsel %vm203_vm4, %v583_v14, %v585_v34 }
 0x618   :  { %v588_v32 = vsel %vm312_vm6, %v586_v18, -inf }
 0x619   :  { %589 = vmax.xlane.f32.xlu1 %v588_v32 }
 0x6a6   :  { %v590_v38 = vpop.xlane.xlu1 %589 }
 0x6a7   :  { %v595_v19 = vrot.slane %v590_v38, %v1084_v9  ;;  %v599_v20 = vrot.slane %v590_v38, %v1122_v46  ;;  %v603_v21 = vrot.slane %v590_v38, %v1124_v47  ;;  %v607_v36 = vrot.slane %v590_v38, %v1126_v48 }
 0x6a9   :  { %v612_v22 = vsub.f32 %v560_v3, %v595_v19  ;;  %v613_v23 = vsub.f32 %v561_v1, %v599_v20  ;;  %v614_v24 = vsub.f32 %v562_v4, %v603_v21  ;;  %v615_v27 = vsub.f32 %v563_v13, %v607_v36 }
 0x6ab   :  { %v616_v25 = vmul.f32 1.442695, %v612_v22  ;;  %v618_v26 = vmul.f32 1.442695, %v613_v23  ;;  %v620_v28 = vmul.f32 1.442695, %v614_v24 }
 0x6ac   :  { %v622_v29 = vmul.f32 1.442695, %v615_v27 }
 0x6ad   :  { %891 = vpow2.f32 %v616_v25 }
 0x6ae   :  { %893 = vpow2.f32 %v618_v26 }
 0x6af   :  { %895 = vpow2.f32 %v620_v28 }
 0x6b0   :  { %897 = vpow2.f32 %v622_v29 }
 0x6b7   :  { %v892_v30 = vpop.eup %891 }
 0x6b8   :  { %v894_v31 = vpop.eup %893  ;;  %629 = vperm.xlu1 %866, %v892_v30  }
 0x6b9   :  { %632 = vperm.xlu0 %865, %v894_v31   ;;  %v896_v35 = vpop.eup %895 }
 0x6ba   :  { %v898_v37 = vpop.eup %897 }
 0x6bc   :  { %635 = vperm.xlu1 %866, %v896_v35  }
 0x6c0   :  { %638 = vperm.xlu1 %866, %v898_v37  }
 0x737   :  { %v630_v39 = vpop.permute.xlu1 %629 }
 0x738   :  { %v633_v40 = vpop.permute.xlu0 %632  ;;  %v643_v43 = vrot.slane %v630_v39, %v1102_v33 }
 0x739   :  { %v647_v42 = vrot.slane %v633_v40, %v1102_v33 }
 0x73b   :  { %v636_v41 = vpop.permute.xlu1 %635  ;;  %v656_v49 = vsel %vm199_vm2, %v647_v42, %v643_v43 }
 0x73c   :  { %v651_v44 = vrot.slane %v636_v41, %v1102_v33 }
 0x73e   :  { %v657_v51 = vsel %vm201_vm3, %v651_v44, %v656_v49 }
 0x73f   :  { %v639_v45 = vpop.permute.xlu1 %638 }
 0x740   :  { %v655_v50 = vrot.slane %v639_v45, %v1102_v33 }
 0x742   :  { %v658_v52 = vsel %vm203_vm4, %v655_v50, %v657_v51 }
 0x743   :  { %v660_v53 = vsel %vm312_vm6, %v658_v52, 0.0 }
 0x744   :  { %661 = vadd.xlane.f32.xlu1 %v660_v53 }
 0x7d1   :  { %v662_v54 = vpop.xlane.xlu1 %661 }
 0x7d2   :  { %v667_v55 = vrot.slane %v662_v54, %v1084_v9  ;;  %v671_v56 = vrot.slane %v662_v54, %v1122_v46  ;;  %v675_v57 = vrot.slane %v662_v54, %v1124_v47  ;;  %v679_v58 = vrot.slane %v662_v54, %v1126_v48 }
 0x7d4   :  { %899 = vrcp.f32 %v667_v55 }
 0x7d5   :  { %901 = vrcp.f32 %v671_v56 }
 0x7d6   :  { %903 = vrcp.f32 %v675_v57 }
 0x7d7   :  { %905 = vrcp.f32 %v679_v58 }
 0x7de   :  { %v900_v33 = vpop.eup %899 }
 0x7df   :  { %v685_v59 = vmul.f32 %v900_v33, %v892_v30  ;;  %v902_v60 = vpop.eup %901 }
 0x7e0   :  { %v687_v5 = vmul.f32 %v902_v60, %v894_v31  ;;  %v904_v61 = vpop.eup %903 }
 0x7e1   :  { %694 = vperm.xlu0 %865, %v685_v59   ;;  %v689_v62 = vmul.f32 %v904_v61, %v896_v35  ;;  %v906_v63 = vpop.eup %905 }
 0x7e2   :  { %v691_v9 = vmul.f32 %v906_v63, %v898_v37 }
 0x7e5   :  { %699 = vperm.xlu0 %865, %v687_v5  }
 0x7e9   :  { %704 = vperm.xlu0 %865, %v689_v62  }
 0x7ed   :  { %709 = vperm.xlu0 %865, %v691_v9  }
 0x860   :  { %v695_v46 = vpop.permute.xlu0 %694 }
 0x861   :  { %v712_v47 = vmul.f32 %v695_v46, %v1066_v15 }
 0x863   :  { %v716_v0 = vsel %vm48_vm0, %v712_v47, 0.0 }
 0x864   :  { %v717_v48 = vrot.slane %v716_v0, 4  ;;  %v700_v1 = vpop.permute.xlu0 %699 }
 0x865   :  { %v713_v2 = vmul.f32 %v1058_v11, %v700_v1 }
 0x866   :  { %v718_v3 = vadd.f32 %v717_v48, %v716_v0 }
 0x867   :  { %v723_v4 = vsel %vm48_vm0, %v713_v2, 0.0 }
 0x868   :  { %v719_v6 = vrot.slane %v718_v3, 2  ;;  %v724_v7 = vrot.slane %v723_v4, 4  ;;  %v705_v8 = vpop.permute.xlu0 %704 }
 0x869   :  { %v714_v10 = vmul.f32 %v705_v8, %v1068_v16 }
 0x86a   :  { %v720_v13 = vadd.f32 %v719_v6, %v718_v3  ;;  %v725_v14 = vadd.f32 %v724_v7, %v723_v4 }
 0x86b   :  { %v730_v17 = vsel %vm48_vm0, %v714_v10, 0.0 }
 0x86c   :  { %v721_v34 = vrot.slane %v720_v13, 1  ;;  %v726_v15 = vrot.slane %v725_v14, 2  ;;  %v731_v18 = vrot.slane %v730_v17, 4  ;;  %v710_v32 = vpop.permute.xlu0 %709 }
 0x86d   :  { %v715_v38 = vmul.f32 %v1060_v12, %v710_v32 }
 0x86e   :  { %v727_v19 = vadd.f32 %v726_v15, %v725_v14  ;;  %v732_v11 = vadd.f32 %v731_v18, %v730_v17  ;;  %v722_v20 = vadd.f32 %v721_v34, %v720_v13 }
 0x86f   :  { %v737_v21 = vsel %vm48_vm0, %v715_v38, 0.0 }
 0x870   :  { %v728_v36 = vrot.slane %v727_v19, 1  ;;  %v733_v22 = vrot.slane %v732_v11, 2  ;;  %v738_v23 = vrot.slane %v737_v21, 4  ;;  %v744_v26 = vmul.f32 %v722_v20, %v722_v20 }
 0x872   :  { %v729_v24 = vadd.f32 %v728_v36, %v727_v19  ;;  %v734_v16 = vadd.f32 %v733_v22, %v732_v11  ;;  %v739_v25 = vadd.f32 %v738_v23, %v737_v21 }
 0x874   :  { %v745_v27 = vmul.f32 %v729_v24, %v729_v24  ;;  %v735_v28 = vrot.slane %v734_v16, 1  ;;  %v740_v29 = vrot.slane %v739_v25, 2  ;;  %v766_v30 = vsel %vm199_vm2, %v729_v24, %v722_v20 }
 0x876   :  { %v736_v31 = vadd.f32 %v735_v28, %v734_v16  ;;  %v741_v35 = vadd.f32 %v740_v29, %v739_v25  ;;  %v752_v12 = vsel %vm199_vm2, %v745_v27, %v744_v26 }
 0x878   :  { %v742_v37 = vrot.slane %v741_v35, 1  ;;  %v746_v39 = vmul.f32 %v736_v31, %v736_v31  ;;  %v767_v40 = vsel %vm201_vm3, %v736_v31, %v766_v30 }
 0x87a   :  { %v743_v41 = vadd.f32 %v742_v37, %v741_v35  ;;  %v753_v42 = vsel %vm201_vm3, %v746_v39, %v752_v12 }
 0x87c   :  { %v747_v43 = vmul.f32 %v743_v41, %v743_v41  ;;  %v768_v44 = vsel %vm203_vm4, %v743_v41, %v767_v40 }
 0x87e   :  { %v754_v45 = vsel %vm203_vm4, %v747_v43, %v753_v42 }
 0x87f   :  { %v756_v49 = vsel %vm206_vm5, %v754_v45, 0.0 }
 0x880   :  { %757 = vadd.xlane.f32.xlu0 %v756_v49 }
 0x90d   :  { %v758_v50 = vpop.xlane.xlu0 %757 }
 0x90e   :  { %v759_v51 = vadd.f32 1.0, %v758_v50  ;;  %v771_v52 = vadd.f32 1e-08, %v758_v50 }
 0x910   :  { %907 = vrcp.f32 %v759_v51 }
 0x911   :  { %909 = vrsqrt.f32 %v771_v52 }
 0x91a   :  { %v908_v53 = vpop.eup %907 }
 0x91b   :  { %v761_v54 = vmul.f32 %v908_v53, %v758_v50  ;;  %v910_v56 = vpop.eup %909 }
 0x91d   :  { %v770_v55 = vmul.f32 %v768_v44, %v761_v54 }
 0x91f   :  { %v773_v57 = vmul.f32 %v910_v56, %v770_v55 }
 0x921   :  { %v783_v58 = vrot.slane %v773_v57, 3  ;;  %v775_v33 = vrot.slane %v773_v57, 1  ;;  %v779_v59 = vrot.slane %v773_v57, 2 }
 0x923   :  { %784 = vrot.lane.b32.xlu0 %v783_v58, %s989_s1  ;;  %776 = vrot.lane.b32.xlu1 %v775_v33, %s990_s6 }
 0x927   :  { %780 = vrot.lane.b32.xlu1 %v779_v59, %s991_s7 }
 0x995   :  { %v777_v60 = vpop.permute.xlu1 %776  ;;  %v785_v62 = vpop.permute.xlu0 %784 }
 0x996   :  { %v787_v5 = vsel %vm48_vm0, %v773_v57, %v777_v60 }
 0x999   :  { %v781_v61 = vpop.permute.xlu1 %780 }
 0x99a   :  { %v789_v63 = vsel %vm788_vm7, %v787_v5, %v781_v61 }
 0x99b   :  { %v791_v9 = vsel %vm790_vm8, %v789_v63, %v785_v62 }
 0x99c   :  { %792 = vst [vmem:[#allocation7] sm:$0x1] %v791_v9 }
 0x99d   :  { %966 = shalt.err (!%p963_p6)
}
 0x99e   :  { %s967_s14 = scalar_lea.hbm %s1236_s2, 16 }
 0x99f   :  { %p968_p7 = scmp.ne.s32.totalorder %s1236_s2, %s967_s14  ;;  %p971_p8 = scmp.lt.u32.totalorder %s967_s14, %s1236_s2 }
 0x9a1   :  { %p973_p9 = pnand %p971_p8, %p968_p7 }
 0x9a3   :  { %976 = shalt.err (!%p973_p9)
}
 0x9a4   :  { %802 = dma.vmem_to_hbm [thread:$0]  %s800_s9, 16, %s1236_s2, [#allocation4]  }
 0x9a5   :  { %981 = dma.done.wait [#allocation4], 16  }
 0x9a6   :  { %982 = vsyncadd [#allocation4], 4294967280 }
 0x9a7   :  { %806 = vsyncpa [#allocation3], 1 }
 0x9a8   :  { %807 = vsyncpa [#allocation6], 1 }
 0x9a9   :  { %808 = vsyncpa [#allocation4], 1 }

</bundles_post_ra>
